<compile_context>
chip_gen: v7x
topology: tpu7x:2x2x1
jax: 0.10.0
libtpu: 0.0.40
codegen_flags: <defaults>
</compile_context>

<pallas_src>
import functools

import jax
import jax.numpy as jnp
from jax.experimental import pallas as pl
from jax.experimental.pallas import tpu as pltpu

LANE = 128      # lane width (last dim of a vreg)
SUBLANE = 8     # f32 sublane count
OUT_W = 8       # narrow output slab width (was 128 -> 16x less HBM writeback)


def _round_up(x, m):
    return (x + m - 1) // m * m


# ---------------------------------------------------------------------------
# Fused kernel: x -> L0 -> ReLU -> L1 -> ReLU -> L2 (VPU reduce) -> [TB, 8] slab
# ---------------------------------------------------------------------------
def _fused_mlp_kernel(x_ref, w0_ref, b0_ref, w1_ref, b1_ref, w2_ref, b2_ref, o_ref):
    # x: [TB, D_IN]; w0: [D_IN, 128]; b0,b1: [1, 128]; w1: [128, 128]
    # w2: [1, 128] (last-layer weight transposed & zero-padded)
    # b2: [1, OUT_W] (scalar bias replicated)
    h = x_ref[...]
    h = jnp.dot(h, w0_ref[...], preferred_element_type=jnp.float32) + b0_ref[...]
    h = jnp.maximum(h, 0.0)                                  # Dropout = identity (eval)
    h = jnp.dot(h, w1_ref[...], preferred_element_type=jnp.float32) + b1_ref[...]
    h = jnp.maximum(h, 0.0)
    # Final 128 -> 1 projection on the VPU + XLU (skip the MXU for a 1-wide RHS).
    y = jnp.sum(h * w2_ref[...], axis=-1, keepdims=True)     # [TB, 1]
    o_ref[...] = (y + b2_ref[...]).astype(o_ref.dtype)       # broadcast -> [TB, OUT_W]


# ---------------------------------------------------------------------------
# Parameter init (matches nn.Linear default: U(+-1/sqrt(fan_in))) and padding
# ---------------------------------------------------------------------------
def init_mlp_params(key, input_dim, hidden_sizes, output_dim):
    dims = [input_dim] + list(hidden_sizes) + [output_dim]
    params = []
    for i in range(len(dims) - 1):
        key, kw, kb = jax.random.split(key, 3)
        fan_in = dims[i]
        bound = 1.0 / float(jnp.sqrt(fan_in))
        w = jax.random.uniform(kw, (dims[i], dims[i + 1]),
                               minval=-bound, maxval=bound, dtype=jnp.float32)
        b = jax.random.uniform(kb, (dims[i + 1],),
                               minval=-bound, maxval=bound, dtype=jnp.float32)
        params.append((w, b))
    return params


def pad_params(raw_params):
    """Zero-pad the 3-layer MLP params to lane-dense weight shapes.

    Only the (tiny, VMEM-resident) weights are padded to 128 lanes; per-row
    activations are never padded.
    """
    assert len(raw_params) == 3, "fused kernel expects exactly 2 hidden layers"
    (w0, b0), (w1, b1), (w2, b2) = raw_params
    d_in, h0 = w0.shape
    h0b, h1 = w1.shape
    h1b, d_out = w2.shape
    assert d_out == 1 and max(h0, h1) <= LANE

    w0_p = jnp.zeros((d_in, LANE), jnp.float32).at[:, :h0].set(w0)   # [16, 128]
    b0_p = jnp.zeros((1, LANE), jnp.float32).at[0, :h0].set(b0)
    w1_p = jnp.zeros((LANE, LANE), jnp.float32).at[:h0b, :h1].set(w1)
    b1_p = jnp.zeros((1, LANE), jnp.float32).at[0, :h1].set(b1)
    # Last layer stored as a row for the VPU reduce; scalar bias replicated so
    # every lane of the narrow output slab holds the correct value.
    w2_row = jnp.zeros((1, LANE), jnp.float32).at[0, :h1b].set(w2[:, 0])
    b2_row = jnp.full((1, OUT_W), b2[0], dtype=jnp.float32)
    return (w0_p, b0_p, w1_p, b1_p, w2_row, b2_row)


# ---------------------------------------------------------------------------
# Wrapper: lean I/O layouts, cdiv grid (no row pad), narrow output slab
# ---------------------------------------------------------------------------
@functools.partial(jax.jit, static_argnames=("row_tile",))
def mlp_forward(h, padded_params, *, row_tile=2048):
    w0, b0, w1, b1, w2, b2 = padded_params
    B, d_in = h.shape
    x = h.astype(jnp.float32)          # no lane padding, no row padding

    # Row tile: as big as possible (per-step overhead amortization), but capped
    # so the "parallel" grid axis has >=2 steps when the batch allows it
    # (lets both v7x TensorCores participate; no-op on v5e/v6e).
    rows8 = _round_up(B, SUBLANE)
    tb = min(row_tile, rows8)
    if rows8 >= 2 * SUBLANE:
        tb = min(tb, _round_up((rows8 + 1) // 2, SUBLANE))
    tb = _round_up(max(tb, SUBLANE), SUBLANE)
    grid = (pl.cdiv(B, tb),)           # partial edge block handled by Pallas

    flops = 2 * B * (d_in * LANE + LANE * LANE) + 5 * B * LANE
    bytes_accessed = (B * d_in + B * OUT_W
                      + d_in * LANE + LANE * LANE + 3 * LANE + OUT_W) * 4

    vmem = pltpu.MemorySpace.VMEM
    out = pl.pallas_call(
        _fused_mlp_kernel,
        out_shape=jax.ShapeDtypeStruct((B, OUT_W), jnp.float32),
        grid_spec=pltpu.PrefetchScalarGridSpec(
            num_scalar_prefetch=0,
            grid=grid,
            in_specs=[
                pl.BlockSpec((tb, d_in), lambda i: (i, 0), memory_space=vmem),
                pl.BlockSpec((d_in, LANE), lambda i: (0, 0), memory_space=vmem),
                pl.BlockSpec((1, LANE), lambda i: (0, 0), memory_space=vmem),
                pl.BlockSpec((LANE, LANE), lambda i: (0, 0), memory_space=vmem),
                pl.BlockSpec((1, LANE), lambda i: (0, 0), memory_space=vmem),
                pl.BlockSpec((1, LANE), lambda i: (0, 0), memory_space=vmem),
                pl.BlockSpec((1, OUT_W), lambda i: (0, 0), memory_space=vmem),
            ],
            out_specs=pl.BlockSpec((tb, OUT_W), lambda i: (i, 0), memory_space=vmem),
        ),
        compiler_params=pltpu.CompilerParams(dimension_semantics=("parallel",)),
        cost_estimate=pl.CostEstimate(flops=flops, transcendentals=0,
                                      bytes_accessed=bytes_accessed),
    )(x, w0, b0, w1, b1, w2, b2)

    # Every lane of the narrow slab holds the per-row scalar; take lane 0.
    # Matches .squeeze() on a [B, 1] output -> shape (B,).
    # (Edge case: PyTorch .squeeze() of a [1,1] tensor is 0-d; we return (1,).)
    return out[:, 0]


if __name__ == "__main__":
    config = {"hidden_size": [32, 32], "dropout": 0.1,
              "activation": "relu", "batch_norm": False}
    input_dim, output_dim = 16, 1
    batch = 8

    key = jax.random.PRNGKey(0)
    key_p, key_x = jax.random.split(key)
    raw_params = init_mlp_params(key_p, input_dim, config["hidden_size"], output_dim)
    padded_params = pad_params(raw_params)
    h = jax.random.normal(key_x, (batch, input_dim), dtype=jnp.float32)

    out = mlp_forward(h, padded_params)
    out = jax.block_until_ready(out)

    # Pure-JAX reference (unpadded params).
    ref = h
    for i, (w, b) in enumerate(raw_params):
        ref = ref @ w + b
        if i != len(raw_params) - 1:
            ref = jnp.maximum(ref, 0.0)
    ref = jnp.squeeze(ref)

    assert out.shape == (batch,), out.shape
    assert jnp.allclose(out, ref, atol=1e-5, rtol=1e-5), (out, ref)

    print("KERNEL_OK")
</pallas_src>

<mosaic_0001>
module attributes {stable_mosaic.version = 11 : i64} {
  func.func @_fused_mlp_kernel(%arg0: i32, %arg1: memref<8x16xf32, #tpu.memory_space<vmem>>, %arg2: memref<16x128xf32, #tpu.memory_space<vmem>>, %arg3: memref<1x128xf32, #tpu.memory_space<vmem>>, %arg4: memref<128x128xf32, #tpu.memory_space<vmem>>, %arg5: memref<1x128xf32, #tpu.memory_space<vmem>>, %arg6: memref<1x128xf32, #tpu.memory_space<vmem>>, %arg7: memref<1x8xf32, #tpu.memory_space<vmem>>, %arg8: memref<8x8xf32, #tpu.memory_space<vmem>>) attributes {dimension_semantics = [#tpu.dimension_semantics<parallel>], iteration_bounds = array<i64: 1>, scalar_prefetch = 0 : i64, scratch_operands = 0 : i64, tpu.core_type = #tpu.core_type<tc>, window_params = [{transform_indices = @transform_0, window_bounds = array<i64: 8, 16>}, {pipeline_mode = #tpu.pipeline_mode<synchronous>, transform_indices = @transform_1, window_bounds = array<i64: 16, 128>}, {pipeline_mode = #tpu.pipeline_mode<synchronous>, transform_indices = @transform_2, window_bounds = array<i64: 1, 128>}, {pipeline_mode = #tpu.pipeline_mode<synchronous>, transform_indices = @transform_3, window_bounds = array<i64: 128, 128>}, {pipeline_mode = #tpu.pipeline_mode<synchronous>, transform_indices = @transform_4, window_bounds = array<i64: 1, 128>}, {pipeline_mode = #tpu.pipeline_mode<synchronous>, transform_indices = @transform_5, window_bounds = array<i64: 1, 128>}, {pipeline_mode = #tpu.pipeline_mode<synchronous>, transform_indices = @transform_6, window_bounds = array<i64: 1, 8>}, {transform_indices = @transform_7, window_bounds = array<i64: 8, 8>}]} {
    %c0 = arith.constant 0 : index
    %c0_0 = arith.constant 0 : index
    %0 = vector.load %arg1[%c0, %c0_0] : memref<8x16xf32, #tpu.memory_space<vmem>>, vector<8x16xf32>
    %c0_1 = arith.constant 0 : index
    %c0_2 = arith.constant 0 : index
    %1 = vector.load %arg2[%c0_1, %c0_2] : memref<16x128xf32, #tpu.memory_space<vmem>>, vector<16x128xf32>
    %cst = arith.constant dense<0.000000e+00> : vector<8x128xf32>
    %2 = tpu.matmul %0, %1, %cst {dimension_numbers = #tpu.dot_dimension_numbers<[1], [0], [0], [1], [0, 0, 1, 1], [], []>} : vector<8x16xf32>, vector<16x128xf32>, vector<8x128xf32> -> vector<8x128xf32>
    %c0_3 = arith.constant 0 : index
    %c0_4 = arith.constant 0 : index
    %3 = vector.load %arg3[%c0_3, %c0_4] : memref<1x128xf32, #tpu.memory_space<vmem>>, vector<1x128xf32>
    %4 = vector.broadcast %3 : vector<1x128xf32> to vector<8x128xf32>
    %5 = arith.addf %2, %4 : vector<8x128xf32>
    %cst_5 = arith.constant 0.000000e+00 : f32
    %6 = vector.broadcast %cst_5 : f32 to vector<8x128xf32>
    %7 = arith.maximumf %5, %6 : vector<8x128xf32>
    %c0_6 = arith.constant 0 : index
    %c0_7 = arith.constant 0 : index
    %8 = vector.load %arg4[%c0_6, %c0_7] : memref<128x128xf32, #tpu.memory_space<vmem>>, vector<128x128xf32>
    %cst_8 = arith.constant dense<0.000000e+00> : vector<8x128xf32>
    %9 = tpu.matmul %7, %8, %cst_8 {dimension_numbers = #tpu.dot_dimension_numbers<[1], [0], [0], [1], [0, 0, 1, 1], [], []>} : vector<8x128xf32>, vector<128x128xf32>, vector<8x128xf32> -> vector<8x128xf32>
    %c0_9 = arith.constant 0 : index
    %c0_10 = arith.constant 0 : index
    %10 = vector.load %arg5[%c0_9, %c0_10] : memref<1x128xf32, #tpu.memory_space<vmem>>, vector<1x128xf32>
    %11 = vector.broadcast %10 : vector<1x128xf32> to vector<8x128xf32>
    %12 = arith.addf %9, %11 : vector<8x128xf32>
    %cst_11 = arith.constant 0.000000e+00 : f32
    %13 = vector.broadcast %cst_11 : f32 to vector<8x128xf32>
    %14 = arith.maximumf %12, %13 : vector<8x128xf32>
    %c0_12 = arith.constant 0 : index
    %c0_13 = arith.constant 0 : index
    %15 = vector.load %arg6[%c0_12, %c0_13] : memref<1x128xf32, #tpu.memory_space<vmem>>, vector<1x128xf32>
    %16 = vector.broadcast %15 : vector<1x128xf32> to vector<8x128xf32>
    %17 = arith.mulf %14, %16 : vector<8x128xf32>
    %cst_14 = arith.constant dense<0.000000e+00> : vector<8xf32>
    %18 = vector.multi_reduction <add>, %17, %cst_14 [1] : vector<8x128xf32> to vector<8xf32>
    %19 = vector.shape_cast %18 : vector<8xf32> to vector<8x1xf32>
    %c0_15 = arith.constant 0 : index
    %c0_16 = arith.constant 0 : index
    %20 = vector.load %arg7[%c0_15, %c0_16] : memref<1x8xf32, #tpu.memory_space<vmem>>, vector<1x8xf32>
    %21 = vector.broadcast %19 : vector<8x1xf32> to vector<8x8xf32>
    %22 = vector.broadcast %20 : vector<1x8xf32> to vector<8x8xf32>
    %23 = arith.addf %21, %22 : vector<8x8xf32>
    %c0_17 = arith.constant 0 : index
    %c0_18 = arith.constant 0 : index
    %24 = vector.load %arg8[%c0_17, %c0_18] : memref<8x8xf32, #tpu.memory_space<vmem>>, vector<8x8xf32>
    tpu.vector_store %arg8[%c0_17, %c0_18], %23 {strides = array<i32>} : memref<8x8xf32, #tpu.memory_space<vmem>>, vector<8x8xf32>,
    return
  }
  func.func @transform_0(%arg0: i32) -> (i32, i32) {
    %c0_i32 = arith.constant 0 : i32
    %c0_i32_0 = arith.constant 0 : i32
    return %arg0, %c0_i32 : i32, i32
  }
  func.func @transform_1(%arg0: i32) -> (i32, i32) {
    %c0_i32 = arith.constant 0 : i32
    %c0_i32_0 = arith.constant 0 : i32
    %c0_i32_1 = arith.constant 0 : i32
    return %c0_i32, %c0_i32_0 : i32, i32
  }
  func.func @transform_2(%arg0: i32) -> (i32, i32) {
    %c0_i32 = arith.constant 0 : i32
    %c0_i32_0 = arith.constant 0 : i32
    %c0_i32_1 = arith.constant 0 : i32
    return %c0_i32, %c0_i32_0 : i32, i32
  }
  func.func @transform_3(%arg0: i32) -> (i32, i32) {
    %c0_i32 = arith.constant 0 : i32
    %c0_i32_0 = arith.constant 0 : i32
    %c0_i32_1 = arith.constant 0 : i32
    return %c0_i32, %c0_i32_0 : i32, i32
  }
  func.func @transform_4(%arg0: i32) -> (i32, i32) {
    %c0_i32 = arith.constant 0 : i32
    %c0_i32_0 = arith.constant 0 : i32
    %c0_i32_1 = arith.constant 0 : i32
    return %c0_i32, %c0_i32_0 : i32, i32
  }
  func.func @transform_5(%arg0: i32) -> (i32, i32) {
    %c0_i32 = arith.constant 0 : i32
    %c0_i32_0 = arith.constant 0 : i32
    %c0_i32_1 = arith.constant 0 : i32
    return %c0_i32, %c0_i32_0 : i32, i32
  }
  func.func @transform_6(%arg0: i32) -> (i32, i32) {
    %c0_i32 = arith.constant 0 : i32
    %c0_i32_0 = arith.constant 0 : i32
    %c0_i32_1 = arith.constant 0 : i32
    return %c0_i32, %c0_i32_0 : i32, i32
  }
  func.func @transform_7(%arg0: i32) -> (i32, i32) {
    %c0_i32 = arith.constant 0 : i32
    %c0_i32_0 = arith.constant 0 : i32
    return %arg0, %c0_i32 : i32, i32
  }
}

</mosaic_0001>

<bundles_post_ra>
// kernel: mlp_forward.1
= control target key start
LH: loop header
LB: loop body
LE: loop exit
PB: predicated region body
PF: predicated region fallthrough
CT: control target
= control target key end

     0   :  { %12 = vsyncpa [#allocation3], 0  ;;  %s547_s0 = inlined_call_operand.hbm [shape: f32[8,16], index: 0, kind: input, shape index: {}]   ;;  %s548_s1 = inlined_call_operand.hbm [shape: f32[16,128], index: 1, kind: input, shape index: {}]   ;;  %s549_s2 = inlined_call_operand.vmem [shape: f32[1,128], index: 2, kind: input, shape index: {}]   ;;  %s550_s3 = inlined_call_operand.hbm [shape: f32[128,128], index: 3, kind: input, shape index: {}]   ;;  %s551_s4 = inlined_call_operand.vmem [shape: f32[1,128], index: 4, kind: input, shape index: {}]   ;;  %s552_s5 = inlined_call_operand.vmem [shape: f32[1,128], index: 5, kind: input, shape index: {}]   ;;  %s553_s6 = inlined_call_operand.vmem [shape: f32[1,8], index: 6, kind: input, shape index: {}]   ;;  %s554_s7 = inlined_call_operand.vmem [shape: f32[8,8], index: 7, kind: output, shape index: {}]  }
   0x1   :  { %13 = vsyncpa [#allocation5], 0  ;;  %s442_s24 = smov [#allocation4]   ;;  %s372_s28 = scalar_lea.hbm %s548_s1, 256 }
   0x2   :  { %s29_s25 = sshll.u32 %s442_s24, 4  ;;  %p373_p0 = scmp.ne.s32.totalorder %s548_s1, %s372_s28  ;;  %s30_s25 = int_to_ptr.vmem [resolvable:$true] %s29_s25 }
   0x3   :  { %p376_p1 = scmp.lt.u32.totalorder %s372_s28, %s548_s1 }
   0x5   :  { %p378_p2 = pnand %p376_p1, %p373_p0 }
   0x7   :  { %381 = shalt.err (!%p378_p2)
}
   0x8   :  { %s382_s10 = scalar_lea.vmem %s30_s25, 256  ;;  %p387_p4 = scmp.lt.s32.totalorder %s30_s25, %s30_s25 }
   0x9   :  { %p383_p3 = scmp.ne.s32.totalorder %s30_s25, %s382_s10  ;;  %p388_p5 = scmp.lt.s32.totalorder %s382_s10, %s382_s10 }
   0xb   :  { %p389_p6 = por %p388_p5, %p387_p4 }
   0xd   :  { %p390_p7 = pnand %p389_p6, %p383_p3 }
   0xf   :  { %393 = shalt.err (!%p390_p7)
}
  0x10   :  { %s443_s11 = smov 128   ;;  %s444_s12 = smov 8  }
  0x11   :  { %35 = dma.hbm_to_vmem [thread:$0]  %s548_s1, 256, %s30_s25, [#allocation5], %s443_s11, %s443_s11, %s444_s12  }
  0x12   :  { %s445_s15 = smov [#allocation2]   ;;  %s446_s17 = smov [#allocation6]  }
  0x13   :  { %s20_s16 = sshll.u32 %s445_s15, 4  ;;  %s43_s18 = sshll.u32 %s446_s17, 4  ;;  %s21_s16 = int_to_ptr.vmem [resolvable:$true] %s20_s16  ;;  %s44_s18 = int_to_ptr.vmem [resolvable:$true] %s43_s18 }
  0x14   :  { %s394_s21 = scalar_lea.hbm %s547_s0, 128 }
  0x15   :  { %p395_p8 = scmp.ne.s32.totalorder %s547_s0, %s394_s21  ;;  %p398_p9 = scmp.lt.u32.totalorder %s394_s21, %s547_s0 }
  0x17   :  { %p400_p10 = pnand %p398_p9, %p395_p8 }
  0x19   :  { %403 = shalt.err (!%p400_p10)
}
  0x1a   :  { %s404_s1 = scalar_lea.vmem %s21_s16, 128  ;;  %p409_p12 = scmp.lt.s32.totalorder %s21_s16, %s21_s16 }
  0x1b   :  { %p405_p11 = scmp.ne.s32.totalorder %s21_s16, %s404_s1  ;;  %p410_p13 = scmp.lt.s32.totalorder %s404_s1, %s404_s1 }
  0x1d   :  { %p411_p0 = por %p410_p13, %p409_p12 }
  0x1f   :  { %p412_p1 = pnand %p411_p0, %p405_p11 }
  0x21   :  { %415 = shalt.err (!%p412_p1)
}
  0x22   :  { %23 = dma.hbm_to_vmem [thread:$0]  %s547_s0, 128, %s21_s16, [#allocation3]  }
  0x23   :  { %s416_s30 = scalar_lea.hbm %s550_s3, 2048 }
  0x24   :  { %p417_p2 = scmp.ne.s32.totalorder %s550_s3, %s416_s30  ;;  %p420_p3 = scmp.lt.u32.totalorder %s416_s30, %s550_s3 }
  0x26   :  { %p422_p4 = pnand %p420_p3, %p417_p2 }
  0x28   :  { %425 = shalt.err (!%p422_p4)
}
  0x29   :  { %s426_s14 = scalar_lea.vmem %s44_s18, 2048  ;;  %p431_p6 = scmp.lt.s32.totalorder %s44_s18, %s44_s18 }
  0x2a   :  { %p427_p5 = scmp.ne.s32.totalorder %s44_s18, %s426_s14  ;;  %p432_p7 = scmp.lt.s32.totalorder %s426_s14, %s426_s14 }
  0x2c   :  { %p433_p8 = por %p432_p7, %p431_p6 }
  0x2e   :  { %p434_p9 = pnand %p433_p8, %p427_p5 }
  0x30   :  { %437 = shalt.err (!%p434_p9)
}
  0x31   :  { %49 = dma.hbm_to_vmem [thread:$0]  %s550_s3, 2048, %s44_s18, [#allocation5], %s443_s11, %s443_s11, %s444_s12  }
  0x32   :  { %438 = dma.done.wait [#allocation3], 128  }
  0x33   :  { %439 = vsyncadd [#allocation3], 4294967168 }
  0x34   :  { %440 = dma.done.wait [#allocation5], 2304  }
  0x35   :  { %441 = vsyncadd [#allocation5], 4294964992  ;;  %v447_v0 = vmov 0.0|0.0   ;;  %vm448_vm0 = vmmov 0   ;;  %v449_v1 = vmov 0.0   ;;  %v66_v2 = vld [vmem:[#allocation4] sm:$0xff] }
  0x36   :  { %337 = vmatprep.subr.bf16.mxu0 %v447_v0  ;;  %299 = vmatprep.mubr.msk.f32.mxu0 %vm448_vm0, %v449_v1  ;;  %v67_v3 = vld [vmem:[#allocation4 + $0x8] sm:$0xff]  ;;  %v150_v5 = vld [vmem:[#allocation6] sm:$0xff]  ;;  %v151_v6 = vld [vmem:[#allocation6 + $0x8] sm:$0xff]  ;;  %vm75_vm1 = vcmask 130048   ;;  %vm262_vm2 = vcmask 64512  }
  0x37   :  { %340 = vmatprep.subr.bf16.mxu1 %v447_v0  ;;  %334 = vmatprep.mubr.msk.f32.mxu1 %vm448_vm0, %v449_v1  ;;  %v338_v4 = vpack.c.bf16 %v67_v3, %v66_v2  ;;  %v152_v7 = vld [vmem:[#allocation6 + $0x10] sm:$0xff]  ;;  %v341_v8 = vpack.c.bf16 %v151_v6, %v150_v5  ;;  %v153_v9 = vld [vmem:[#allocation6 + $0x18] sm:$0xff]  ;;  %v65_v10 = vld [vmem:[#allocation2] sm:$0xff] }
  0x38   :  { %v344_v11 = vpack.c.bf16 %v153_v9, %v152_v7  ;;  %v154_v12 = vld [vmem:[#allocation6 + $0x20] sm:$0xff]  ;;  %v155_v13 = vld [vmem:[#allocation6 + $0x28] sm:$0xff]  ;;  %v156_v15 = vld [vmem:[#allocation6 + $0x30] sm:$0xff] }
  0x39   :  { %339 = vmatpush3.bf16.msra.mxu0 %v338_v4  ;;  %342 = vmatpush3.bf16.msra.mxu1 %v341_v8  ;;  %v347_v14 = vpack.c.bf16 %v155_v13, %v154_v12  ;;  %v157_v16 = vld [vmem:[#allocation6 + $0x38] sm:$0xff]  ;;  %v158_v18 = vld [vmem:[#allocation6 + $0x40] sm:$0xff]  ;;  %v159_v19 = vld [vmem:[#allocation6 + $0x48] sm:$0xff] }
  0x3a   :  { %343 = vmatprep.subr.bf16.mxu1 %v447_v0  ;;  %v350_v17 = vpack.c.bf16 %v157_v16, %v156_v15  ;;  %v353_v20 = vpack.c.bf16 %v159_v19, %v158_v18  ;;  %v160_v21 = vld [vmem:[#allocation6 + $0x50] sm:$0xff]  ;;  %v161_v22 = vld [vmem:[#allocation6 + $0x58] sm:$0xff]  ;;  %v162_v24 = vld [vmem:[#allocation6 + $0x60] sm:$0xff] }
  0x3b   :  { %v356_v23 = vpack.c.bf16 %v161_v22, %v160_v21  ;;  %v163_v25 = vld [vmem:[#allocation6 + $0x68] sm:$0xff]  ;;  %v164_v27 = vld [vmem:[#allocation6 + $0x70] sm:$0xff]  ;;  %v165_v28 = vld [vmem:[#allocation6 + $0x78] sm:$0xff] }
  0x3c   :  { %300 = vmatmul.mubr.msk.f32.vlgmr.msra.gmra.mrb[0].mxu0 %vm75_vm1, %v65_v10  ;;  %v359_v26 = vpack.c.bf16 %v163_v25, %v162_v24  ;;  %v362_v29 = vpack.c.bf16 %v165_v28, %v164_v27  ;;  %v270_v30 = vld [vmem:[%s549_s2] ss:$0 sm:$0xff] }
  0x3d   :  { %345 = vmatpush3.bf16.msra.mxu1 %v344_v11  ;;  %v272_v35 = vld [vmem:[%s551_s4] ss:$0 sm:$0xff] }
  0x3e   :  { %346 = vmatprep.subr.bf16.mxu1 %v447_v0  ;;  %v273_v39 = vld [vmem:[%s552_s5] ss:$0 sm:$0xff] }
  0x3f   :  { %v274_v42 = vld [vmem:[%s553_s6] ss:$0 sm:$0xff] }
  0x41   :  { %348 = vmatpush3.bf16.msra.mxu1 %v347_v14 }
  0x42   :  { %349 = vmatprep.subr.bf16.mxu1 %v447_v0 }
  0x45   :  { %351 = vmatpush3.bf16.msra.mxu1 %v350_v17 }
  0x46   :  { %352 = vmatprep.subr.bf16.mxu1 %v447_v0 }
  0x49   :  { %354 = vmatpush3.bf16.msra.mxu1 %v353_v20 }
  0x4a   :  { %355 = vmatprep.subr.bf16.mxu1 %v447_v0 }
  0x4d   :  { %357 = vmatpush3.bf16.msra.mxu1 %v356_v23 }
  0x4e   :  { %358 = vmatprep.subr.bf16.mxu1 %v447_v0 }
  0x51   :  { %360 = vmatpush3.bf16.msra.mxu1 %v359_v26 }
  0x52   :  { %361 = vmatprep.subr.bf16.mxu1 %v447_v0 }
  0x55   :  { %363 = vmatpush3.bf16.msra.mxu1 %v362_v29 }
 0x10f   :  { %v145_v31 = vpop.f32.mrb[0].mxu0 }
 0x110   :  { %v146_v32 = vadd.f32 %v270_v30, %v145_v31  ;;  %v301_v33 = vpop.f32.mrb[1].mxu0 }
 0x112   :  { %v149_v34 = vmax.f32 %v146_v32, 0.0 }
 0x114   :  { %335 = vmatmul.mubr.f32.vlgmr.msra.gmra.mrb[0].mxu1 %v149_v34 }
 0x1e7   :  { %v239_v36 = vpop.f32.mrb[0].mxu1 }
 0x1e8   :  { %v240_v37 = vadd.f32 %v272_v35, %v239_v36  ;;  %v336_v38 = vpop.f32.mrb[1].mxu1 }
 0x1ea   :  { %v243_v40 = vmax.f32 %v240_v37, 0.0 }
 0x1ec   :  { %v251_v41 = vmul.f32 %v273_v39, %v243_v40 }
 0x1ee   :  { %252 = vadd.xlane.f32.xlu0 %v251_v41 }
 0x27b   :  { %v253_v43 = vpop.xlane.xlu0 %252 }
 0x27c   :  { %v261_v44 = vadd.f32 %v274_v42, %v253_v43 }
 0x27e   :  { %263 = vst.msk [vmem:[%s554_s7] sm:$0xff] %vm262_vm2, %v261_v44 }
 0x27f   :  { %268 = vsyncpa [#allocation3], 1 }
 0x280   :  { %269 = vsyncpa [#allocation5], 1 }

</bundles_post_ra>
